<compile_context>
chip_gen: v7x
topology: tpu7x:2x2x1
jax: 0.10.0
libtpu: 0.0.40
codegen_flags: <defaults>
</compile_context>

<pallas_src>
import functools
import math

import jax
import jax.numpy as jnp
from jax.experimental import pallas as pl
from jax.experimental.pallas import tpu as pltpu

LANES = 128                      # lane width (vreg minor dim)
BLOCK_ROWS = 4096                # sublane rows per grid block (multiple of 8)
NUM_CORES = 2                    # leading 'parallel' axis for v7x megacore
VMEM_LIMIT_BYTES = 40 * 1024 * 1024   # > v5e's 16 MiB default, < v7x's 64 MiB


def _focal_kernel(x_ref, t_ref, o_ref, acc_ref, *, alpha, gamma, eps,
                  j_per_core, full_blocks, rows, blk_rows):
    j = pl.program_id(1)
    g = pl.program_id(0) * j_per_core + j           # global block index

    @pl.when(j == 0)
    def _():
        acc_ref[...] = jnp.zeros_like(acc_ref)

    x = x_ref[...].astype(jnp.float32)
    is_pos = t_ref[...] == 1                        # native target dtype compare
    z = jnp.where(is_pos, -x, x)                    # pt == sigmoid(-z)

    # -log(pt) with the module's prob clip folded in:
    #   clamp(softplus(z), -log(1-eps), -log(eps))
    sp = jnp.maximum(z, 0.0) + jnp.log1p(jnp.exp(-jnp.abs(z)))
    fl = jnp.clip(sp,
                  jnp.float32(-math.log1p(-eps)),   # ~= eps
                  jnp.float32(-math.log(eps)))      # ~= 13.8 for eps=1e-6

    # (1 - pt)^gamma with the same clip; trace-time specialization on gamma.
    if gamma != 0.0:
        one_m_pt = jnp.clip(jax.nn.sigmoid(z),
                            jnp.float32(eps), jnp.float32(1.0 - eps))
        if gamma == 1.0:
            fl = fl * one_m_pt
        elif gamma == 2.0:
            fl = fl * (one_m_pt * one_m_pt)
        else:
            fl = fl * jnp.power(one_m_pt, jnp.float32(gamma))
    if alpha != 1.0:
        fl = fl * jnp.where(is_pos, jnp.float32(alpha), jnp.float32(1.0))

    def _reduce_to_acc(v):
        # (blk_rows,128) -> (8,128) partial sums.  The major-dim split reshape
        # is a free view; the sum lowers to VALU adds (no XLU reduce).
        return jnp.sum(v.reshape(blk_rows // 8, 8, LANES), axis=0)

    # Fully-valid blocks: no masking work at all (steady state).
    @pl.when(g < full_blocks)
    def _():
        acc_ref[...] += _reduce_to_acc(fl)

    # Ragged / redundant blocks: rows-only mask (select, never multiply).
    @pl.when(g >= full_blocks)
    def _():
        row = jax.lax.broadcasted_iota(jnp.int32, fl.shape, 0) + g * blk_rows
        acc_ref[...] += _reduce_to_acc(
            jnp.where(row < rows, fl, jnp.float32(0.0)))

    @pl.when(j == pl.num_programs(1) - 1)
    def _():
        o_ref[...] = acc_ref[...]


def _focal_elementwise(x, t, alpha, gamma, eps):
    """Per-element focal loss exactly as the PyTorch module (pure XLA)."""
    x = x.astype(jnp.float32)
    prob = jnp.clip(jax.nn.sigmoid(x), eps, 1.0 - eps)
    is_pos = t == 1
    pt = jnp.where(is_pos, prob, 1.0 - prob)
    a = jnp.where(is_pos, jnp.float32(alpha), jnp.float32(1.0))
    return -a * jnp.power(1.0 - pt, jnp.float32(gamma)) * jnp.log(pt)


def binary_focal_loss(output, target, alpha=1.0, gamma=0.0, eps=1e-6):
    """Mean binary focal loss; matches BinaryFocalLoss.forward."""
    assert output.shape == target.shape
    n_valid = int(output.size)
    if n_valid == 0:
        return jnp.float32(jnp.nan)     # torch.mean of an empty tensor

    x = jnp.ravel(output)               # native dtype; cast to f32 in-kernel
    t = jnp.ravel(target)               # native dtype; only compared against 1

    rows = n_valid // LANES             # lane-aligned prefix rows
    tail = n_valid - rows * LANES       # <=127 ragged-tail elements (XLA path)

    total = jnp.float32(0.0)

    if rows > 0:
        if tail:
            x_main, t_main = x[:rows * LANES], t[:rows * LANES]
        else:
            x_main, t_main = x, t       # free reshape: no pad, no copy
        x2 = x_main.reshape(rows, LANES)
        t2 = t_main.reshape(rows, LANES)

        blk_rows = min(BLOCK_ROWS, pl.cdiv(rows, 8) * 8)   # multiple of 8
        num_blocks = pl.cdiv(rows, blk_rows)
        j_per_core = pl.cdiv(num_blocks, NUM_CORES)
        full_blocks = rows // blk_rows            # blocks with every row valid

        def in_map(c, j):
            # Clamp so cores with leftover iterations re-read a valid block
            # (their contribution is masked to zero inside the kernel).
            return (jnp.minimum(c * j_per_core + j, num_blocks - 1), 0)

        kernel = functools.partial(
            _focal_kernel,
            alpha=float(alpha), gamma=float(gamma), eps=float(eps),
            j_per_core=j_per_core, full_blocks=full_blocks,
            rows=rows, blk_rows=blk_rows)

        partials = pl.pallas_call(
            kernel,
            out_shape=jax.ShapeDtypeStruct((NUM_CORES * 8, LANES), jnp.float32),
            grid_spec=pltpu.PrefetchScalarGridSpec(
                num_scalar_prefetch=0,
                grid=(NUM_CORES, j_per_core),
                in_specs=[
                    pl.BlockSpec((blk_rows, LANES), in_map),
                    pl.BlockSpec((blk_rows, LANES), in_map),
                ],
                out_specs=pl.BlockSpec((8, LANES), lambda c, j: (c, 0)),
                scratch_shapes=[pltpu.VMEM((8, LANES), jnp.float32)],
            ),
            compiler_params=pltpu.CompilerParams(
                dimension_semantics=("parallel", "arbitrary"),
                vmem_limit_bytes=VMEM_LIMIT_BYTES),
        )(x2, t2)
        total = total + jnp.sum(partials)

    if tail:
        # <=127 leftover elements: negligible work, done in XLA so the main
        # slab never needs an extra HBM pad/copy pass.
        total = total + jnp.sum(
            _focal_elementwise(x[rows * LANES:], t[rows * LANES:],
                               alpha, gamma, eps))

    return total / jnp.float32(n_valid)


def _reference(output, target, alpha=1.0, gamma=0.0, eps=1e-6):
    return jnp.mean(_focal_elementwise(jnp.ravel(output), jnp.ravel(target),
                                       alpha, gamma, eps))


if __name__ == "__main__":
    key = jax.random.PRNGKey(0)
    k1, k2 = jax.random.split(key)
    shape = (2, 4, 16, 16)  # NCHW-style logits / targets
    logits = jax.random.normal(k1, shape, dtype=jnp.float32)
    target = (jax.random.uniform(k2, shape) > 0.5).astype(jnp.float32)

    # Module defaults (alpha=1, gamma=0).
    loss = jax.block_until_ready(binary_focal_loss(logits, target,
                                                   alpha=1.0, gamma=0.0))
    ref = jax.block_until_ready(_reference(logits, target, alpha=1.0, gamma=0.0))
    assert jnp.allclose(loss, ref, rtol=2e-5, atol=1e-6), (loss, ref)

    # Non-default class weight / focusing parameter.
    loss2 = jax.block_until_ready(binary_focal_loss(logits, target,
                                                    alpha=0.25, gamma=2.0))
    ref2 = jax.block_until_ready(_reference(logits, target, alpha=0.25, gamma=2.0))
    assert jnp.allclose(loss2, ref2, rtol=2e-5, atol=1e-6), (loss2, ref2)

    print("KERNEL_OK")
</pallas_src>

<mosaic_0001>
module attributes {stable_mosaic.version = 11 : i64} {
  func.func @_focal_kernel(%arg0: i32, %arg1: i32, %arg2: memref<16x128xf32, #tpu.memory_space<vmem>>, %arg3: memref<16x128xf32, #tpu.memory_space<vmem>>, %arg4: memref<8x128xf32, #tpu.memory_space<vmem>>, %arg5: memref<8x128xf32, #tpu.memory_space<vmem>>) attributes {dimension_semantics = [#tpu.dimension_semantics<parallel>, #tpu.dimension_semantics<arbitrary>], iteration_bounds = array<i64: 2, 1>, scalar_prefetch = 0 : i64, scratch_operands = 1 : i64, tpu.core_type = #tpu.core_type<tc>, window_params = [{transform_indices = @transform_0, window_bounds = array<i64: 16, 128>}, {transform_indices = @transform_1, window_bounds = array<i64: 16, 128>}, {transform_indices = @transform_2, window_bounds = array<i64: 8, 128>}]} {
    %c1_i32 = arith.constant 1 : i32
    %0 = arith.muli %arg0, %c1_i32 : i32
    %1 = arith.addi %0, %arg1 : i32
    %c0_i32 = arith.constant 0 : i32
    %2 = arith.cmpi eq, %arg1, %c0_i32 : i32
    %3 = arith.extui %2 : i1 to i32
    %c0_i32_0 = arith.constant 0 : i32
    %4 = arith.cmpi ne, %3, %c0_i32_0 : i32
    scf.if %4 {
      %cst_15 = arith.constant 0.000000e+00 : f32
      %33 = vector.broadcast %cst_15 : f32 to vector<8x128xf32>
      %c0_16 = arith.constant 0 : index
      %c0_17 = arith.constant 0 : index
      %34 = vector.load %arg5[%c0_16, %c0_17] : memref<8x128xf32, #tpu.memory_space<vmem>>, vector<8x128xf32>
      tpu.vector_store %arg5[%c0_16, %c0_17], %33 {strides = array<i32>} : memref<8x128xf32, #tpu.memory_space<vmem>>, vector<8x128xf32>,
    } else {
    }
    %c0 = arith.constant 0 : index
    %c0_1 = arith.constant 0 : index
    %5 = vector.load %arg2[%c0, %c0_1] : memref<16x128xf32, #tpu.memory_space<vmem>>, vector<16x128xf32>
    %c0_2 = arith.constant 0 : index
    %c0_3 = arith.constant 0 : index
    %6 = vector.load %arg3[%c0_2, %c0_3] : memref<16x128xf32, #tpu.memory_space<vmem>>, vector<16x128xf32>
    %cst = arith.constant 1.000000e+00 : f32
    %7 = vector.broadcast %cst : f32 to vector<16x128xf32>
    %8 = arith.cmpf oeq, %6, %7 : vector<16x128xf32>
    %cst_4 = arith.constant 0.000000e+00 : f32
    %9 = vector.broadcast %cst_4 : f32 to vector<16x128xf32>
    %10 = arith.subf %9, %5 : vector<16x128xf32>
    %11 = arith.select %8, %10, %5 : vector<16x128xi1>, vector<16x128xf32>
    %cst_5 = arith.constant 0.000000e+00 : f32
    %12 = vector.broadcast %cst_5 : f32 to vector<16x128xf32>
    %13 = arith.maximumf %11, %12 : vector<16x128xf32>
    %14 = math.absf %11 : vector<16x128xf32>
    %cst_6 = arith.constant 0.000000e+00 : f32
    %15 = vector.broadcast %cst_6 : f32 to vector<16x128xf32>
    %16 = arith.subf %15, %14 : vector<16x128xf32>
    %17 = math.exp %16 : vector<16x128xf32>
    %18 = math.log1p %17 : vector<16x128xf32>
    %19 = arith.addf %13, %18 : vector<16x128xf32>
    %cst_7 = arith.constant 1.00000045E-6 : f32
    %cst_8 = arith.constant 13.8155107 : f32
    %20 = vector.broadcast %cst_7 : f32 to vector<16x128xf32>
    %21 = arith.maximumf %20, %19 : vector<16x128xf32>
    %22 = vector.broadcast %cst_8 : f32 to vector<16x128xf32>
    %23 = arith.minimumf %22, %21 : vector<16x128xf32>
    %c1_i32_9 = arith.constant 1 : i32
    %24 = arith.cmpi slt, %1, %c1_i32_9 : i32
    %25 = arith.extui %24 : i1 to i32
    %c0_i32_10 = arith.constant 0 : i32
    %26 = arith.cmpi ne, %25, %c0_i32_10 : i32
    scf.if %26 {
      %c0_15 = arith.constant 0 : index
      %c0_16 = arith.constant 0 : index
      %33 = vector.load %arg5[%c0_15, %c0_16] : memref<8x128xf32, #tpu.memory_space<vmem>>, vector<8x128xf32>
      %34 = vector.shape_cast %23 : vector<16x128xf32> to vector<2x8x128xf32>
      %cst_17 = arith.constant dense<0.000000e+00> : vector<8x128xf32>
      %35 = vector.multi_reduction <add>, %34, %cst_17 [0] : vector<2x8x128xf32> to vector<8x128xf32>
      %36 = arith.addf %33, %35 : vector<8x128xf32>
      %c0_18 = arith.constant 0 : index
      %c0_19 = arith.constant 0 : index
      %37 = vector.load %arg5[%c0_18, %c0_19] : memref<8x128xf32, #tpu.memory_space<vmem>>, vector<8x128xf32>
      tpu.vector_store %arg5[%c0_18, %c0_19], %36 {strides = array<i32>} : memref<8x128xf32, #tpu.memory_space<vmem>>, vector<8x128xf32>,
    } else {
    }
    %c1_i32_11 = arith.constant 1 : i32
    %27 = arith.cmpi sge, %1, %c1_i32_11 : i32
    %28 = arith.extui %27 : i1 to i32
    %c0_i32_12 = arith.constant 0 : i32
    %29 = arith.cmpi ne, %28, %c0_i32_12 : i32
    scf.if %29 {
      %33 = tpu.iota {dimensions = array<i32: 0>} : vector<16x128xi32>
      %c16_i32 = arith.constant 16 : i32
      %34 = arith.muli %1, %c16_i32 : i32
      %35 = vector.broadcast %34 : i32 to vector<16x128xi32>
      %36 = arith.addi %33, %35 : vector<16x128xi32>
      %c0_15 = arith.constant 0 : index
      %c0_16 = arith.constant 0 : index
      %37 = vector.load %arg5[%c0_15, %c0_16] : memref<8x128xf32, #tpu.memory_space<vmem>>, vector<8x128xf32>
      %c16_i32_17 = arith.constant 16 : i32
      %38 = vector.broadcast %c16_i32_17 : i32 to vector<16x128xi32>
      %39 = arith.cmpi slt, %36, %38 : vector<16x128xi32>
      %cst_18 = arith.constant 0.000000e+00 : f32
      %40 = vector.broadcast %cst_18 : f32 to vector<16x128xf32>
      %41 = arith.select %39, %23, %40 : vector<16x128xi1>, vector<16x128xf32>
      %42 = vector.shape_cast %41 : vector<16x128xf32> to vector<2x8x128xf32>
      %cst_19 = arith.constant dense<0.000000e+00> : vector<8x128xf32>
      %43 = vector.multi_reduction <add>, %42, %cst_19 [0] : vector<2x8x128xf32> to vector<8x128xf32>
      %44 = arith.addf %37, %43 : vector<8x128xf32>
      %c0_20 = arith.constant 0 : index
      %c0_21 = arith.constant 0 : index
      %45 = vector.load %arg5[%c0_20, %c0_21] : memref<8x128xf32, #tpu.memory_space<vmem>>, vector<8x128xf32>
      tpu.vector_store %arg5[%c0_20, %c0_21], %44 {strides = array<i32>} : memref<8x128xf32, #tpu.memory_space<vmem>>, vector<8x128xf32>,
    } else {
    }
    %c0_i32_13 = arith.constant 0 : i32
    %30 = arith.cmpi eq, %arg1, %c0_i32_13 : i32
    %31 = arith.extui %30 : i1 to i32
    %c0_i32_14 = arith.constant 0 : i32
    %32 = arith.cmpi ne, %31, %c0_i32_14 : i32
    scf.if %32 {
      %c0_15 = arith.constant 0 : index
      %c0_16 = arith.constant 0 : index
      %33 = vector.load %arg5[%c0_15, %c0_16] : memref<8x128xf32, #tpu.memory_space<vmem>>, vector<8x128xf32>
      %c0_17 = arith.constant 0 : index
      %c0_18 = arith.constant 0 : index
      %34 = vector.load %arg4[%c0_17, %c0_18] : memref<8x128xf32, #tpu.memory_space<vmem>>, vector<8x128xf32>
      tpu.vector_store %arg4[%c0_17, %c0_18], %33 {strides = array<i32>} : memref<8x128xf32, #tpu.memory_space<vmem>>, vector<8x128xf32>,
    } else {
    }
    return
  }
  func.func @transform_0(%arg0: i32, %arg1: i32) -> (i32, i32) {
    %c1_i32 = arith.constant 1 : i32
    %0 = arith.muli %arg0, %c1_i32 : i32
    %1 = arith.addi %0, %arg1 : i32
    %c0_i32 = arith.constant 0 : i32
    %2 = arith.minsi %1, %c0_i32 : i32
    %c0_i32_0 = arith.constant 0 : i32
    %c0_i32_1 = arith.constant 0 : i32
    return %2, %c0_i32_0 : i32, i32
  }
  func.func @transform_1(%arg0: i32, %arg1: i32) -> (i32, i32) {
    %c1_i32 = arith.constant 1 : i32
    %0 = arith.muli %arg0, %c1_i32 : i32
    %1 = arith.addi %0, %arg1 : i32
    %c0_i32 = arith.constant 0 : i32
    %2 = arith.minsi %1, %c0_i32 : i32
    %c0_i32_0 = arith.constant 0 : i32
    %c0_i32_1 = arith.constant 0 : i32
    return %2, %c0_i32_0 : i32, i32
  }
  func.func @transform_2(%arg0: i32, %arg1: i32) -> (i32, i32) {
    %c0_i32 = arith.constant 0 : i32
    %c0_i32_0 = arith.constant 0 : i32
    return %arg0, %c0_i32 : i32, i32
  }
}

</mosaic_0001>

<bundles_post_ra>
// kernel: tpu_custom_call.1
= control target key start
LH: loop header
LB: loop body
LE: loop exit
PB: predicated region body
PF: predicated region fallthrough
CT: control target
= control target key end

     0   :  { %7 = vsyncpa [#allocation4], 0  ;;  %s963_s0 = inlined_call_operand.hbm [shape: f32[16,128], index: 0, kind: input, shape index: {}]   ;;  %s964_s1 = inlined_call_operand.hbm [shape: f32[16,128], index: 1, kind: input, shape index: {}]   ;;  %s965_s2 = inlined_call_operand.hbm [shape: f32[16,128], index: 2, kind: output, shape index: {}]  }
   0x1   :  { %9 = vsyncpa [#allocation4 + $0x1], 0 }
   0x2   :  { %10 = vsyncpa [#allocation7], 0 }
   0x3   :  { %12 = vsyncpa [#allocation7 + $0x1], 0 }
   0x4   :  { %13 = vsyncpa [#allocation5], 0 }
   0x5   :  { %15 = vsyncpa [#allocation5 + $0x1], 0  ;;  %s752_s9 = smov 0   ;;  %s754_s10 = smov 0  }
   0x6   :  { %s756_s11 = smov 0   ;;  %s758_s12 = smov 0  }
   0x7   :  { %s760_s13 = smov 0   ;;  %s762_s14 = smov 0  }
   0x8   :  { %s764_s15 = smov 0   ;;  %s766_s16 = smov 0  }
   0x9 LB: > { %s437_s17 = sadd.s32 4294967295, %s729_s16   ;;  %s438_s18 = sadd.s32 4294967294, %s729_s16   ;;  %s729_s16 = sphi %s766_s16, %s21_s16   ;;  %s725_s15 = sphi %s764_s15, %s984_s15   ;;  %s721_s14 = sphi %s762_s14, %s983_s14   ;;  %s717_s13 = sphi %s760_s13, %s953_s13   ;;  %s713_s12 = sphi %s758_s12, %s982_s12   ;;  %s709_s11 = sphi %s756_s11, %s981_s11   ;;  %s705_s10 = sphi %s754_s10, %s980_s10   ;;  %s701_s9 = sphi %s752_s9, %s979_s9  }
   0xa   : > { %s33_s19 = sadd.s32 1, %s725_s15  ;;  %p698_p1 = scmp.ne.s32.totalorder %s717_s13, 0 }
   0xb   : > { %p35_p0 = scmp.ge.s32.totalorder %s33_s19, 2  ;;  %p54_p2 = scmp.eq.s32.totalorder %s729_s16, 0 }
   0xc   : > { %p59_p3 = scmp.ne.s32.totalorder %s717_s13, %s713_s12  ;;  %p60_p5 = scmp.eq.s32.totalorder %s437_s17, 0 }
   0xd   : > { %s986_s19 = smov (%p35_p0, %s33_s19), 0  ;;  %p798_p4 = por %p698_p1, %p54_p2 }
   0xe   : > { %p802_p6 = por %p60_p5, %p59_p3  ;;  %s101_s22 = ssub.s32 %s725_s15, %s986_s19 }
   0xf   : > { %p102_p7 = scmp.eq.s32.totalorder %s101_s22, 0  ;;  %s104_s23 = sadd.s32 1, %s709_s11 }
  0x10   : > { %s969_s21 = scalar_select %p802_p6, 1, 0 }
  0x11   : > { %s810_s24 = scalar_select %p102_p7, %s709_s11, %s104_s23  }
  0x12   : > { %p114_p8 = scmp.ne.s32.totalorder %s709_s11, %s705_s10  ;;  %p115_p9 = scmp.eq.s32.totalorder %s437_s17, 1 }
  0x13   : > { %p120_p10 = scmp.ne.s32.totalorder %s705_s10, %s701_s9  ;;  %p121_p11 = scmp.eq.s32.totalorder %s438_s18, 1 }
  0x14   : > { %p816_p12 = por %p115_p9, %p114_p8  ;;  %p477_p1 = scmp.lt.s32.totalorder %s729_s16, 2 }
  0x15   : > { %p821_p0 = por %p121_p11, %p120_p10  ;;  %s731_s27 = smov [#allocation3]  }
  0x16   : > { %s970_s25 = scalar_select %p816_p12, 1, 0 }
  0x17   : > { %s971_s26 = scalar_select %p821_p0, 1, 0 }
  0x18   : > { %s155_s28 = sshll.u32 %s731_s27, 4  ;;  %p828_p2 = pnand %p477_p1, %p798_p4  ;;  %s156_s28 = int_to_ptr.vmem [resolvable:$true] %s155_s28 }
  0x19   : > { %s562_s4 = scalar_lea.hbm %s963_s0, 256 }
  0x1a   : > { %p563_p3 = scmp.ne.s32.totalorder %s963_s0, %s562_s4  ;;  %p564_p5 = pneg %p828_p2 }
  0x1b   : > { %p569_p8 = scmp.lt.u32.totalorder %s562_s4, %s562_s4  ;;  %p571_p9 = scmp.lt.u32.totalorder %s562_s4, %s963_s0 }
  0x1c   : > { %p565_p7 = pnand %p564_p5, %p563_p3 }
  0x1d   : > { %p572_p10 = por %p571_p9, %p569_p8 }
  0x1e   : > { %p566_p4 = pneg %p565_p7 }
  0x20   : > { %p573_p11 = pnand %p572_p10, %p566_p4 }
  0x22   : > { %576 = shalt.err (!%p573_p11)
}
  0x23   : > { %s577_s12 = scalar_lea.vmem %s156_s28, 256  ;;  %s584_s17 = scalar_lea.vmem %s156_s28, 512 }
  0x24   : > { %p578_p1 = scmp.ne.s32.totalorder %s156_s28, %s577_s12  ;;  %p585_p12 = scmp.lt.s32.totalorder %s156_s28, %s156_s28 }
  0x25   : > { %p586_p6 = scmp.lt.s32.totalorder %s584_s17, %s577_s12 }
  0x26   : > { %p580_p13 = pnand %p578_p1, %p564_p5 }
  0x27   : > { %p587_p3 = por %p586_p6, %p585_p12 }
  0x28   : > { %p581_p0 = pneg %p580_p13 }
  0x2a   : > { %p588_p7 = pnand %p587_p3, %p581_p0 }
  0x2c   : > { %591 = shalt.err (!%p588_p7)
}
  0x2d   : > { %s732_s18 = smov 128   ;;  %s733_s20 = smov 8  }
  0x2e   : > { %469 = dma.hbm_to_vmem [thread:$0]  (!%p828_p2), %s963_s0, 256, %s156_s28, [#allocation4], %s732_s18, %s732_s18, %s733_s20  }
  0x2f   : > { %p447_p13 = scmp.ge.s32.totalorder %s729_s16, 1  ;;  %p187_p4 = scmp.lt.s32.totalorder %s729_s16, 3 }
  0x30   : > { %s734_s30 = smov [#allocation6]   ;;  %s592_s6 = scalar_lea.hbm %s964_s1, 256 }
  0x31   : > { %p859_p8 = pnand %p447_p13, %p187_p4  ;;  %s179_s3 = sshll.u32 %s734_s30, 4  ;;  %s180_s3 = int_to_ptr.vmem [resolvable:$true] %s179_s3 }
  0x32   : > { %p593_p6 = scmp.ne.s32.totalorder %s964_s1, %s592_s6  ;;  %p599_p9 = scmp.lt.u32.totalorder %s592_s6, %s592_s6 }
  0x33   : > { %s973_s27 = scalar_select %p859_p8, 1, 0 }
  0x34   : > { %p595_p12 = pnand %p593_p6, %p564_p5  ;;  %p601_p10 = scmp.lt.u32.totalorder %s592_s6, %s964_s1 }
  0x36   : > { %p596_p0 = pneg %p595_p12  ;;  %p602_p11 = por %p601_p10, %p599_p9 }
  0x38   : > { %p603_p1 = pnand %p602_p11, %p596_p0 }
  0x3a   : > { %606 = shalt.err (!%p603_p1)
}
  0x3b   : > { %s607_s17 = scalar_lea.vmem %s180_s3, 256  ;;  %s614_s22 = scalar_lea.vmem %s180_s3, 512 }
  0x3c   : > { %p608_p3 = scmp.ne.s32.totalorder %s180_s3, %s607_s17  ;;  %p615_p4 = scmp.lt.s32.totalorder %s180_s3, %s180_s3 }
  0x3d   : > { %p616_p8 = scmp.lt.s32.totalorder %s614_s22, %s607_s17 }
  0x3e   : > { %p610_p7 = pnand %p608_p3, %p564_p5 }
  0x3f   : > { %p617_p6 = por %p616_p8, %p615_p4 }
  0x40   : > { %p611_p13 = pneg %p610_p7 }
  0x42   : > { %p618_p12 = pnand %p617_p6, %p611_p13 }
  0x44   : > { %621 = shalt.err (!%p618_p12)
}
  0x45   : > { %472 = dma.hbm_to_vmem [thread:$0]  (!%p828_p2), %s964_s1, 256, %s180_s3, [#allocation7], %s732_s18, %s732_s18, %s733_s20  }
  0x46   : > { %p974_p0 = scmp.ne.s32.totalorder %s973_s27, 0 }
  0x47   : > { %s193_s4 = sand.u32 (!%p974_p0), 1, %s717_s13   ;;  %p975_p5 = scmp.ne.s32.totalorder (!%p974_p0), %s969_s21, 0 }
  0x48   : > { %191 = sbr.rel (%p974_p0) target bundleno = 172 (0xac), region = 28  ;;  %s448_s5 = sshll.u32 (!%p974_p0), %s193_s4, 4 }
  0x49   : > { %s194_s6 = scalar_lea.sflag (!%p974_p0), [#allocation4], %s193_s4  ;;  %s197_s7 = scalar_lea.vmem (!%p974_p0), [#allocation3], %s448_s5 }
  0x4f   : > { %687 = dma.done.wait (%p975_p5), %s194_s6, 256  }
  0x50   : > { %689 = vsyncadd (%p975_p5), %s194_s6, 4294967040  ;;  %s203_s29 = scalar_lea.sflag [#allocation7], %s193_s4  ;;  %s206_s8 = scalar_lea.vmem [#allocation6], %s448_s5 }
  0x51   : > { %691 = dma.done.wait (%p975_p5), %s203_s29, 256  }
  0x52   : > { %693 = vsyncadd (%p975_p5), %s203_s29, 4294967040  ;;  %s229_s18 = sand.u32 1, %s705_s10   ;;  %v735_v0 = vmov 0.0   ;;  %v246_v1 = vld [vmem:[%s197_s7] sm:$0xff]  ;;  %v247_v2 = vld [vmem:[%s197_s7 + $0x8] sm:$0xff]  ;;  %p451_p2 = scmp.ge.s32.totalorder %s721_s14, 1 }
  0x53   : > { %s900_s20 = sshll.u32 %s229_s18, 3  ;;  %245 = vst [vmem:[#allocation2] sm:$0xff] %v735_v0  ;;  %v248_v3 = vld [vmem:[%s206_s8] sm:$0xff]  ;;  %v249_v4 = vld [vmem:[%s206_s8 + $0x8] sm:$0xff]  ;;  %v252_v5 = vsub.f32 0.0, %v246_v1  ;;  %v253_v6 = vsub.f32 0.0, %v247_v2 }
  0x54   : > { %vm250_vm0 = vcmp.eq.f32.partialorder %v248_v3, 1.0  ;;  %vm251_vm1 = vcmp.eq.f32.partialorder %v249_v4, 1.0  ;;  %s231_s21 = scalar_lea.vmem [#allocation8], %s900_s20 }
  0x55   : > { %v254_v7 = vsel %vm250_vm0, %v252_v5, %v246_v1  ;;  %v255_v8 = vsel %vm251_vm1, %v253_v6, %v247_v2 }
  0x56   : > { %v258_v9 = vand.u32 2147483647, %v254_v7  ;;  %v259_v10 = vand.u32 2147483647, %v255_v8  ;;  %v256_v27 = vmax.f32 %v254_v7, 0.0  ;;  %v257_v30 = vmax.f32 %v255_v8, 0.0 }
  0x58   : > { %v260_v11 = vsub.f32 0.0, %v258_v9  ;;  %v261_v12 = vsub.f32 0.0, %v259_v10 }
  0x5a   : > { %v262_v13 = vmul.f32 1.442695, %v260_v11  ;;  %v264_v14 = vmul.f32 1.442695, %v261_v12  ;;  %v294_v41 = vld [vmem:[#allocation2] sm:$0xff] (!%p451_p2) }
  0x5c   : > { %554 = vpow2.f32 %v262_v13 }
  0x5d   : > { %556 = vpow2.f32 %v264_v14 }
  0x66   : > { %v555_v15 = vpop.eup %554 }
  0x67   : > { %v557_v16 = vpop.eup %556  ;;  %v266_v17 = vadd.f32 1.0, %v555_v15  ;;  %v269_v19 = vmul.f32 -0.5, %v555_v15  ;;  %v272_v22 = vand.u32 2147483647, %v555_v15 }
  0x68   : > { %v275_v18 = vadd.f32 1.0, %v557_v16  ;;  %v278_v20 = vmul.f32 -0.5, %v557_v16  ;;  %v281_v24 = vand.u32 2147483647, %v557_v16 }
  0x69   : > { %558 = vlog2.f32 %v266_v17  ;;  %v270_v21 = vadd.f32 1.0, %v269_v19  ;;  %vm273_vm2 = vcmp.lt.f32.partialorder %v272_v22, 0.0004427343 }
  0x6a   : > { %560 = vlog2.f32 %v275_v18  ;;  %v279_v23 = vadd.f32 1.0, %v278_v20  ;;  %vm282_vm3 = vcmp.lt.f32.partialorder %v281_v24, 0.0004427343 }
  0x6b   : > { %v271_v25 = vmul.f32 %v555_v15, %v270_v21 }
  0x6c   : > { %v280_v28 = vmul.f32 %v557_v16, %v279_v23 }
  0x73   : > { %v559_v26 = vpop.eup %558 }
  0x74   : > { %v561_v29 = vpop.eup %560  ;;  %v268_v31 = vmul.f32 0.6931472, %v559_v26 }
  0x75   : > { %v277_v32 = vmul.f32 0.6931472, %v561_v29 }
  0x76   : > { %v274_v33 = vsel %vm273_vm2, %v271_v25, %v268_v31  ;;  %293 = sbr.rel (%p451_p2) target bundleno = 131 (0x83), region = 44 }
  0x77   : > { %v283_v34 = vsel %vm282_vm3, %v280_v28, %v277_v32  ;;  %v284_v35 = vadd.f32 %v274_v33, %v256_v27 }
  0x78   : > { %v285_v36 = vadd.f32 %v283_v34, %v257_v30 }
  0x79   : > { %v286_v37 = vmax.f32 %v284_v35, 1.0000005e-06 }
  0x7a   : > { %v287_v38 = vmax.f32 %v285_v36, 1.0000005e-06 }
  0x7b   : > { %v288_v39 = vmin.f32 %v286_v37, 13.815511 }
  0x7c   : > { %v289_v40 = vmin.f32 %v287_v38, 13.815511 }
  0x7e   : > { %v295_v42 = vadd.f32 %v289_v40, %v288_v39 }
  0x80   : > { %v296_v43 = vadd.f32 %v295_v42, %v294_v41 }
  0x82   : > { %297 = vst [vmem:[#allocation2] sm:$0xff] %v296_v43 }
  0x83 PF: > { %p452_p8 = scmp.lt.s32.totalorder %s721_s14, 1 }
  0x84   : > { %v302_v44 = vlaneseq (!%p452_p8)  ;;  %s453_s27 = sshll.u32 (!%p452_p8), %s721_s14, 4 }
  0x85   : > { %301 = sbr.rel (%p452_p8) target bundleno = 147 (0x93), region = 48  ;;  %v306_v45 = vstv (!%p452_p8), %s453_s27 }
  0x86   : > { %v303_v46 = vshrl.u32 (!%p452_p8), %v302_v44, 7 }
  0x88   : > { %v304_v47 = vadd.s32 (!%p452_p8), 8, %v303_v46  ;;  %v307_v48 = vadd.s32 (!%p452_p8), %v306_v45, %v303_v46 }
  0x89   : > { %v309_v51 = vld [vmem:[#allocation2] sm:$0xff] (!%p452_p8) }
  0x8a   : > { %v308_v49 = vadd.s32 (!%p452_p8), %v306_v45, %v304_v47  ;;  %vm310_vm4 = vcmp.lt.s32.totalorder (!%p452_p8), %v307_v48, 16 }
  0x8b   : > { %v312_v50 = vsel (!%p452_p8), %vm310_vm4, %v288_v39, 0.0 }
  0x8c   : > { %vm311_vm5 = vcmp.lt.s32.totalorder %v308_v49, 16 }
  0x8d   : > { %v313_v52 = vsel %vm311_vm5, %v289_v40, 0.0 }
  0x8e   : > { %v314_v53 = vadd.f32 %v313_v52, %v312_v50 }
  0x90   : > { %v315_v54 = vadd.f32 %v314_v53, %v309_v51 }
  0x92   : > { %316 = vst [vmem:[#allocation2] sm:$0xff] %v315_v54 }
  0x93 PF: > { %s455_s3 = sshll.u32 %s721_s14, 7  ;;  %s336_s22 = sshll.u32 %s231_s21, 4  ;;  %s337_s22 = int_to_ptr.vmem [resolvable:$true] %s336_s22 }
  0x94   : > { %s912_s17 = scalar_lea.hbm %s965_s2, %s455_s3  ;;  %s323_s23 = scalar_lea.sflag [#allocation5], %s229_s18 }
  0x95   : > { %s622_s30 = scalar_lea.vmem %s337_s22, 128  ;;  %p976_p10 = scmp.ne.s32.totalorder %s970_s25, 0 }
  0x96   : > { %p623_p9 = scmp.ne.s32.totalorder %s337_s22, %s622_s30  ;;  %s736_s4 = smov [#allocation8]  }
  0x97   : > { %s626_s5 = sshll.u32 %s736_s4, 4  ;;  %s627_s5 = int_to_ptr.vmem [resolvable:$false] %s626_s5 }
  0x98   : > { %p624_p11 = pnand %p623_p9, %p976_p10  ;;  %s628_s14 = scalar_lea.vmem %s627_s5, 256 }
  0x99   : > { %v320_v55 = vld [vmem:[#allocation2] sm:$0xff]  ;;  %p629_p3 = scmp.lt.s32.totalorder %s337_s22, %s627_s5  ;;  %p630_p7 = scmp.lt.s32.totalorder %s628_s14, %s622_s30 }
  0x9a   : > { %321 = vst [vmem:[%s231_s21] sm:$0xff] %v320_v55  ;;  %p625_p1 = pneg %p624_p11 }
  0x9b   : > { %p631_p13 = por %p630_p7, %p629_p3 }
  0x9d   : > { %p632_p4 = pnand %p631_p13, %p625_p1 }
  0x9f   : > { %635 = shalt.err (!%p632_p4)
}
  0xa0   : > { %s636_s6 = scalar_lea.hbm %s912_s17, 128  ;;  %s640_s8 = scalar_lea.hbm %s965_s2, 256 }
  0xa1   : > { %p637_p6 = scmp.ne.s32.totalorder %s912_s17, %s636_s6  ;;  %p641_p5 = scmp.lt.u32.totalorder %s912_s17, %s965_s2 }
  0xa2   : > { %p642_p2 = scmp.lt.u32.totalorder %s640_s8, %s636_s6  ;;  %p644_p9 = scmp.lt.u32.totalorder %s636_s6, %s912_s17 }
  0xa3   : > { %p638_p12 = pnand %p637_p6, %p976_p10 }
  0xa4   : > { %p643_p8 = por %p642_p2, %p641_p5 }
  0xa5   : > { %p639_p0 = pneg %p638_p12 }
  0xa6   : > { %p645_p11 = por %p644_p9, %p643_p8 }
  0xa8   : > { %p646_p1 = pnand %p645_p11, %p639_p0 }
  0xaa   : > { %649 = shalt.err (!%p646_p1)
}
  0xab   : > { %464 = dma.vmem_to_hbm [thread:$0]  (%p976_p10), %s337_s22, 128, %s912_s17, %s323_s23  }
  0xac PF: > { %s348_s21 = sand.u32 1, %s701_s9   ;;  %p977_p3 = scmp.ne.s32.totalorder %s971_s26, 0 }
  0xad   : > { %p978_p7 = scmp.ge.s32.totalorder %s729_s16, 2  ;;  %s349_s27 = scalar_lea.sflag [#allocation5], %s348_s21 }
  0xaf   : > { %p474_p13 = pnand %p978_p7, %p977_p3 }
  0xb1   : > { %695 = dma.done.wait (!%p474_p13), %s349_s27, 128  }
  0xb2   : > { %697 = vsyncadd (!%p474_p13), %s349_s27, 4294967168  ;;  %s21_s16 = sadd.s32 1, %s729_s16   ;;  %s979_s9 = smov %s705_s10 }
  0xb3   : > { %p18_p4 = scmp.ge.s32.totalorder %s21_s16, 4   ;;  %s980_s10 = smov %s709_s11 }
  0xb4   : > { %s981_s11 = smov %s810_s24  ;;  %s982_s12 = smov %s717_s13 }
  0xb5   : > { %s953_s13 = smov 0   ;;  %s983_s14 = smov %s725_s15 }
  0xb6   : > { %s984_s15 = smov %s986_s19  ;;  %20 = sbr.rel (!%p18_p4) target bundleno = 9 (0x9), region = 102 }
  0xbd   :  { %354 = vsyncpa [#allocation4], 1 }
  0xbe   :  { %356 = vsyncpa [#allocation4 + $0x1], 1 }
  0xbf   :  { %357 = vsyncpa [#allocation7], 1 }
  0xc0   :  { %359 = vsyncpa [#allocation7 + $0x1], 1 }
  0xc1   :  { %360 = vsyncpa [#allocation5], 1 }
  0xc2   :  { %362 = vsyncpa [#allocation5 + $0x1], 1 }

</bundles_post_ra>
